<compile_context>
chip_gen: v6e
topology: v6e:2x2x1
jax: 0.10.0
libtpu: 0.0.40
codegen_flags: <defaults>
</compile_context>

<pallas_src>
import functools

import numpy as np
import jax
import jax.numpy as jnp
from jax import lax
from jax.experimental import pallas as pl
from jax.experimental.pallas import tpu as pltpu


def _round_up(x, m):
    return ((x + m - 1) // m) * m


def _largest_divisor_leq(n, cap):
    cap = int(max(1, min(n, cap)))
    for d in range(cap, 0, -1):
        if n % d == 0:
            return d
    return 1


def _tpu_vmem_and_cores():
    """(VMEM bytes per core, is_dual_tensorcore).

    Falls back to conservative v7x-like numbers if the query is unavailable.
    Heuristic: v7x exposes 64 MiB VMEM and 2 TensorCores/chip, v5e/v6e expose
    128 MiB and a single TensorCore.
    """
    vmem = 64 * 1024 * 1024
    try:
        vmem = int(pltpu.get_tpu_info().vmem_capacity_bytes)
    except Exception:
        pass
    multi_tc = vmem <= 80 * 1024 * 1024
    return vmem, multi_tc


def _exclusive_cumsum_lanes(x, limit):
    """Exclusive prefix sum along the last (lane) axis.

    Hillis-Steele scan: ceil(log2(limit)) static `pltpu.roll` steps + masked
    adds on the otherwise idle XLU/VPU.  Only the first `limit` lanes need to
    be correct (the rest is padding that gets sliced off).
    """
    lane = lax.broadcasted_iota(jnp.int32, x.shape, x.ndim - 1)
    acc = x
    shift = 1
    while shift < limit:
        rolled = pltpu.roll(acc, shift=shift, axis=x.ndim - 1)
        acc = acc + jnp.where(lane >= shift, rolled, 0)
        shift *= 2
    return acc - x  # inclusive -> exclusive


# ----------------------------------------------------------------------------
# Path 1: selection-matrix matmul on the MXU (good when T is not << S).
# ----------------------------------------------------------------------------
def _compact_matmul_kernel(gate_ref, dense_ref, out_ref, *, precision):
    """gate_ref : (Bblk, 1, S_pad) f32   raw gate, lane-padded with zeros
       dense_ref: (Bblk, S, E)           per-position embeddings (f32/bf16)
       out_ref  : (Bblk, T, E)      f32  compacted embeddings"""
    _, S, _ = dense_ref.shape
    T = out_ref.shape[1]

    g = jnp.round(gate_ref[...])                       # torch.round semantics
    sel = g == 1.0                                     # (Bblk, 1, S_pad)
    excl = _exclusive_cumsum_lanes(sel.astype(jnp.int32), S)
    slot = jnp.where(sel, excl, -1)[:, :, :S]          # output slot, or -1

    t_iota = lax.broadcasted_iota(jnp.int32, (1, T, S), 1)  # shared over batch
    P = (slot == t_iota).astype(dense_ref.dtype)            # (Bblk, T, S) 0/1

    out_ref[...] = jnp.einsum(
        'bts,bse->bte', P, dense_ref[...],
        precision=precision,
        preferred_element_type=jnp.float32).astype(out_ref.dtype)


def _compact_via_matmul(dense, gate, T):
    B, S, E = dense.shape
    isz = dense.dtype.itemsize
    S_pad = _round_up(S, 128)

    # Only the tiny gate is padded (B * S_pad * 4 bytes); `dense` is tiled with
    # full-extent (S, E) block dims, so no padded copy of the big tensor.
    gate_p = jnp.zeros((B, 1, S_pad), jnp.float32).at[:, 0, :S].set(gate)

    vmem_cap, multi_tc = _tpu_vmem_and_cores()
    budget = int(0.42 * vmem_cap)
    vmem_limit = int(0.75 * vmem_cap)

    bytes_per_row = (
        2 * S * E * isz            # double-buffered dense block
        + 2 * T * E * 4            # double-buffered out block
        + 2 * S_pad * 4            # double-buffered gate block
        + T * S * (4 + isz)        # P matrix (+ cast copy)
        + 16 * S_pad)              # roll-scan temporaries
    cap = max(1, budget // bytes_per_row)
    if multi_tc and B >= 2:
        # v7x only: keep >= 2 grid steps per TensorCore so both cores pipeline.
        cap = min(cap, max(1, B // 4))
    block_b = _largest_divisor_leq(B, cap)
    num_blocks = B // block_b

    cost = pl.CostEstimate(
        flops=2 * B * T * S * E,
        transcendentals=0,
        bytes_accessed=B * S * E * isz + B * S_pad * 4 + B * T * E * 4)

    def build(precision):
        return pl.pallas_call(
            functools.partial(_compact_matmul_kernel, precision=precision),
            grid=(num_blocks,),
            in_specs=[
                pl.BlockSpec((block_b, 1, S_pad), lambda b: (b, 0, 0)),
                pl.BlockSpec((block_b, S, E), lambda b: (b, 0, 0)),
            ],
            out_specs=pl.BlockSpec((block_b, T, E), lambda b: (b, 0, 0)),
            out_shape=jax.ShapeDtypeStruct((B, T, E), jnp.float32),
            compiler_params=pltpu.CompilerParams(
                dimension_semantics=("parallel",),
                vmem_limit_bytes=vmem_limit),
            cost_estimate=cost,
        )

    # P is {0,1}: a HIGHEST-precision f32 matmul is a bit-exact row copy.
    # Fall back to default precision if the lowering rejects the attribute.
    prec = (lax.Precision.HIGHEST if dense.dtype == jnp.float32
            else lax.Precision.DEFAULT)
    try:
        return build(prec)(gate_p, dense)
    except Exception:
        if prec == lax.Precision.DEFAULT:
            raise
        return build(lax.Precision.DEFAULT)(gate_p, dense)


# ----------------------------------------------------------------------------
# Path 2: scalar-prefetch DMA gather (T << S) — only selected rows leave HBM.
# ----------------------------------------------------------------------------
def _compact_gather_kernel(idx_ref, num_ref, dense_ref, out_ref, buf, sems):
    """idx_ref  : SMEM (B*T,) int32  flattened selected-row indices (clamped)
       num_ref  : SMEM (B,)   int32  tokens kept per row (<= T)
       dense_ref: HBM  (B, S, E)     memory_space=pl.ANY, DMA'd manually
       out_ref  : VMEM (1, T, E) f32 compacted output block
       buf      : VMEM (1, T, E)     gather landing buffer (dense dtype)
       sems     : DMA semaphores (T,)"""
    b = pl.program_id(0)
    _, T, _ = buf.shape

    for t in range(T):                      # static unroll: T independent DMAs
        row = idx_ref[b * T + t]
        pltpu.make_async_copy(
            dense_ref.at[pl.ds(b, 1), pl.ds(row, 1), :],
            buf.at[pl.ds(0, 1), pl.ds(t, 1), :],
            sems.at[t]).start()
    for t in range(T):
        pltpu.make_async_copy(
            dense_ref.at[pl.ds(b, 1), pl.ds(0, 1), :],
            buf.at[pl.ds(0, 1), pl.ds(t, 1), :],
            sems.at[t]).wait()

    n = num_ref[b]
    slot = lax.broadcasted_iota(jnp.int32, buf.shape, 1)
    out_ref[...] = jnp.where(slot < n, buf[...], 0).astype(out_ref.dtype)


def _compact_via_gather(dense, gate, T, token_nums):
    B, S, E = dense.shape
    isz = dense.dtype.itemsize

    # Per-row indices of the first T selected positions (cheap XLA-side prep):
    # unselected positions get sentinel S, a sort moves the selected ones (in
    # order) to the front, and the sentinel is clamped so the speculative DMA
    # of an unused slot stays in bounds (it is masked to zero in-kernel).
    sel = jnp.round(gate) == 1.0
    pos = lax.broadcasted_iota(jnp.int32, (B, S), 1)
    keys = jnp.where(sel, pos, jnp.int32(S))
    idx = jnp.minimum(jnp.sort(keys, axis=-1)[:, :T], S - 1).astype(jnp.int32)
    idx_flat = idx.reshape(B * T)

    vmem_cap, _ = _tpu_vmem_and_cores()
    cost = pl.CostEstimate(
        flops=B * T * E,
        transcendentals=0,
        bytes_accessed=B * T * E * (isz + 4) + B * (T + 1) * 4)

    grid_spec = pltpu.PrefetchScalarGridSpec(
        num_scalar_prefetch=2,
        grid=(B,),
        in_specs=[pl.BlockSpec(memory_space=pl.ANY)],   # dense stays in HBM
        out_specs=pl.BlockSpec((1, T, E), lambda b, idx_r, num_r: (b, 0, 0)),
        scratch_shapes=[pltpu.VMEM((1, T, E), dense.dtype),
                        pltpu.SemaphoreType.DMA((T,))])

    return pl.pallas_call(
        _compact_gather_kernel,
        grid_spec=grid_spec,
        out_shape=jax.ShapeDtypeStruct((B, T, E), jnp.float32),
        compiler_params=pltpu.CompilerParams(
            dimension_semantics=("parallel",),
            vmem_limit_bytes=int(0.75 * vmem_cap)),
        cost_estimate=cost,
    )(idx_flat, token_nums, dense)


# ----------------------------------------------------------------------------
# Public wrapper.
# ----------------------------------------------------------------------------
def predict_embeddings(dense_result, gate_result, max_tokens, *,
                       gather_min_ratio=4):
    """Pallas equivalent of BaseEmbeddingModel.predict_embeddings with
    start_token = end_token = pad_token = None and a static max_tokens."""
    B, S, E = dense_result.shape
    T = int(max_tokens)

    # bf16 dense is kept as-is (half the HBM traffic); everything else -> f32.
    if dense_result.dtype in (jnp.float32, jnp.bfloat16):
        dense = dense_result
    else:
        dense = dense_result.astype(jnp.float32)
    gate = gate_result.astype(jnp.float32)

    # token_nums = clamp(sum(round(gate)), max=max_tokens): trivial XLA reduce,
    # kept out of the kernel (no per-step scalar-output DMA).
    token_nums = jnp.minimum(
        jnp.sum(jnp.round(gate), axis=-1), jnp.float32(T)).astype(jnp.int32)

    if T * gather_min_ratio <= S:
        out = _compact_via_gather(dense, gate, T, token_nums)
    else:
        out = _compact_via_matmul(dense, gate, T)
    return out, token_nums


def _reference(dense, gate, max_tokens):
    """Straight NumPy port of the PyTorch loops (no start/end/pad tokens)."""
    dense = np.asarray(dense).astype(np.float32)
    gate = np.asarray(gate).astype(np.float32)
    B, S, E = dense.shape
    g = np.round(gate)
    token_nums = np.minimum(g.sum(axis=1), max_tokens).astype(np.int32)
    out = np.zeros((B, max_tokens, E), np.float32)
    for i in range(B):
        t = 0
        for j in range(S):
            if g[i, j] == 1.0 and t < max_tokens:
                out[i, t] = dense[i, j]
                t += 1
    return out, token_nums


if __name__ == "__main__":
    key = jax.random.PRNGKey(0)

    configs = [
        # (batch, seq, embed, max_tokens, dense_dtype, gate_scale)
        (2, 8, 32, 6, jnp.float32, 1.0),       # matmul path (T*4 > S)
        (4, 16, 32, 5, jnp.float32, 1.0),      # matmul path
        (2, 16, 32, 8, jnp.bfloat16, 0.6),     # matmul path, bf16, sparse gate
        (3, 256, 128, 8, jnp.float32, 1.0),    # gather path (T << S), clamp
        (2, 64, 128, 16, jnp.bfloat16, 0.55),  # gather path, rows < max_tokens
    ]
    for (B, S, E, MAX_TOKENS, dt, scale) in configs:
        key, k_dense, k_gate = jax.random.split(key, 3)
        # Synthetic forward() outputs: per-position embeddings + gate values.
        dense_result = jax.random.normal(
            k_dense, (B, S, E), dtype=jnp.float32).astype(dt)
        gate_result = jax.random.uniform(
            k_gate, (B, S), dtype=jnp.float32) * scale

        out, token_nums = predict_embeddings(dense_result, gate_result,
                                             MAX_TOKENS)
        out, token_nums = jax.block_until_ready((out, token_nums))

        ref_out, ref_nums = _reference(dense_result, gate_result, MAX_TOKENS)
        assert np.allclose(np.asarray(out), ref_out, atol=1e-6), \
            f"embedding mismatch for config {(B, S, E, MAX_TOKENS, dt)}"
        assert np.array_equal(np.asarray(token_nums), ref_nums), \
            f"token_nums mismatch for config {(B, S, E, MAX_TOKENS, dt)}"

    print("KERNEL_OK")
</pallas_src>

<mosaic_0001>
module attributes {stable_mosaic.version = 11 : i64} {
  func.func @_compact_matmul_kernel(%arg0: i32, %arg1: memref<1x1x128xf32, #tpu.memory_space<vmem>>, %arg2: memref<1x8x32xf32, #tpu.memory_space<vmem>>, %arg3: memref<1x6x32xf32, #tpu.memory_space<vmem>>) attributes {dimension_semantics = [#tpu.dimension_semantics<parallel>], iteration_bounds = array<i64: 2>, scalar_prefetch = 0 : i64, scratch_operands = 0 : i64, tpu.core_type = #tpu.core_type<tc>, window_params = [{transform_indices = @transform_0, window_bounds = array<i64: 1, 1, 128>}, {transform_indices = @transform_1, window_bounds = array<i64: 1, 8, 32>}, {transform_indices = @transform_2, window_bounds = array<i64: 1, 6, 32>}]} {
    %c0 = arith.constant 0 : index
    %c0_0 = arith.constant 0 : index
    %c0_1 = arith.constant 0 : index
    %0 = vector.load %arg1[%c0, %c0_0, %c0_1] : memref<1x1x128xf32, #tpu.memory_space<vmem>>, vector<1x1x128xf32>
    %1 = math.roundeven %0 : vector<1x1x128xf32>
    %cst = arith.constant 1.000000e+00 : f32
    %2 = vector.broadcast %cst : f32 to vector<1x1x128xf32>
    %3 = arith.cmpf oeq, %1, %2 : vector<1x1x128xf32>
    %4 = arith.extui %3 : vector<1x1x128xi1> to vector<1x1x128xi32>
    %5 = tpu.iota {dimensions = array<i32: 2>} : vector<1x1x128xi32>
    %c1_i32 = arith.constant 1 : i32
    %6 = tpu.dynamic_rotate %4 by %c1_i32 dim 2 : vector<1x1x128xi32>, i32 -> vector<1x1x128xi32>
    %c1_i32_2 = arith.constant 1 : i32
    %7 = vector.broadcast %c1_i32_2 : i32 to vector<1x1x128xi32>
    %8 = arith.cmpi sge, %5, %7 : vector<1x1x128xi32>
    %c0_i32 = arith.constant 0 : i32
    %9 = vector.broadcast %c0_i32 : i32 to vector<1x1x128xi32>
    %10 = arith.select %8, %6, %9 : vector<1x1x128xi1>, vector<1x1x128xi32>
    %11 = arith.addi %4, %10 : vector<1x1x128xi32>
    %c2_i32 = arith.constant 2 : i32
    %12 = tpu.dynamic_rotate %11 by %c2_i32 dim 2 : vector<1x1x128xi32>, i32 -> vector<1x1x128xi32>
    %c2_i32_3 = arith.constant 2 : i32
    %13 = vector.broadcast %c2_i32_3 : i32 to vector<1x1x128xi32>
    %14 = arith.cmpi sge, %5, %13 : vector<1x1x128xi32>
    %c0_i32_4 = arith.constant 0 : i32
    %15 = vector.broadcast %c0_i32_4 : i32 to vector<1x1x128xi32>
    %16 = arith.select %14, %12, %15 : vector<1x1x128xi1>, vector<1x1x128xi32>
    %17 = arith.addi %11, %16 : vector<1x1x128xi32>
    %c4_i32 = arith.constant 4 : i32
    %18 = tpu.dynamic_rotate %17 by %c4_i32 dim 2 : vector<1x1x128xi32>, i32 -> vector<1x1x128xi32>
    %c4_i32_5 = arith.constant 4 : i32
    %19 = vector.broadcast %c4_i32_5 : i32 to vector<1x1x128xi32>
    %20 = arith.cmpi sge, %5, %19 : vector<1x1x128xi32>
    %c0_i32_6 = arith.constant 0 : i32
    %21 = vector.broadcast %c0_i32_6 : i32 to vector<1x1x128xi32>
    %22 = arith.select %20, %18, %21 : vector<1x1x128xi1>, vector<1x1x128xi32>
    %23 = arith.addi %17, %22 : vector<1x1x128xi32>
    %24 = arith.subi %23, %4 : vector<1x1x128xi32>
    %c-1_i32 = arith.constant -1 : i32
    %25 = vector.broadcast %c-1_i32 : i32 to vector<1x1x128xi32>
    %26 = arith.select %3, %24, %25 : vector<1x1x128xi1>, vector<1x1x128xi32>
    %27 = vector.extract_strided_slice %26 {offsets = [0, 0, 0], sizes = [1, 1, 8], strides = [1, 1, 1]} : vector<1x1x128xi32> to vector<1x1x8xi32>
    %28 = tpu.iota {dimensions = array<i32: 1>} : vector<1x6x8xi32>
    %29 = vector.broadcast %27 : vector<1x1x8xi32> to vector<1x6x8xi32>
    %30 = arith.cmpi eq, %29, %28 : vector<1x6x8xi32>
    %31 = arith.extui %30 : vector<1x6x8xi1> to vector<1x6x8xi32>
    %32 = arith.sitofp %31 : vector<1x6x8xi32> to vector<1x6x8xf32>
    %c0_7 = arith.constant 0 : index
    %c0_8 = arith.constant 0 : index
    %c0_9 = arith.constant 0 : index
    %33 = vector.load %arg2[%c0_7, %c0_8, %c0_9] : memref<1x8x32xf32, #tpu.memory_space<vmem>>, vector<1x8x32xf32>
    "tpu.trace_start"() <{level = 10 : i32, message = "bts,bse->bte"}> : () -> ()
    %cst_10 = arith.constant dense<0.000000e+00> : vector<1x6x32xf32>
    %34 = tpu.matmul %32, %33, %cst_10 {dimension_numbers = #tpu.dot_dimension_numbers<[2], [1], [1], [2], [0, 0, 0, 1, 1, 2], [0], [0]>, precision = #tpu.contract_precision<fp32>} : vector<1x6x8xf32>, vector<1x8x32xf32>, vector<1x6x32xf32> -> vector<1x6x32xf32>
    "tpu.trace_stop"() : () -> ()
    %c0_11 = arith.constant 0 : index
    %c0_12 = arith.constant 0 : index
    %c0_13 = arith.constant 0 : index
    %35 = vector.load %arg3[%c0_11, %c0_12, %c0_13] : memref<1x6x32xf32, #tpu.memory_space<vmem>>, vector<1x6x32xf32>
    tpu.vector_store %arg3[%c0_11, %c0_12, %c0_13], %34 {strides = array<i32>} : memref<1x6x32xf32, #tpu.memory_space<vmem>>, vector<1x6x32xf32>,
    return
  }
  func.func @transform_0(%arg0: i32) -> (i32, i32, i32) {
    %c0_i32 = arith.constant 0 : i32
    %c0_i32_0 = arith.constant 0 : i32
    %c0_i32_1 = arith.constant 0 : i32
    return %arg0, %c0_i32, %c0_i32_0 : i32, i32, i32
  }
  func.func @transform_1(%arg0: i32) -> (i32, i32, i32) {
    %c0_i32 = arith.constant 0 : i32
    %c0_i32_0 = arith.constant 0 : i32
    %c0_i32_1 = arith.constant 0 : i32
    return %arg0, %c0_i32, %c0_i32_0 : i32, i32, i32
  }
  func.func @transform_2(%arg0: i32) -> (i32, i32, i32) {
    %c0_i32 = arith.constant 0 : i32
    %c0_i32_0 = arith.constant 0 : i32
    %c0_i32_1 = arith.constant 0 : i32
    return %arg0, %c0_i32, %c0_i32_0 : i32, i32, i32
  }
}

module attributes {stable_mosaic.version = 11 : i64} {
  func.func @_compact_matmul_kernel(%arg0: i32, %arg1: memref<1x1x128xf32, #tpu.memory_space<vmem>>, %arg2: memref<1x8x32xf32, #tpu.memory_space<vmem>>, %arg3: memref<1x6x32xf32, #tpu.memory_space<vmem>>) attributes {dimension_semantics = [#tpu.dimension_semantics<parallel>], iteration_bounds = array<i64: 2>, scalar_prefetch = 0 : i64, scratch_operands = 0 : i64, tpu.core_type = #tpu.core_type<tc>, window_params = [{transform_indices = @transform_0, window_bounds = array<i64: 1, 1, 128>}, {transform_indices = @transform_1, window_bounds = array<i64: 1, 8, 32>}, {transform_indices = @transform_2, window_bounds = array<i64: 1, 6, 32>}]} {
    %c0 = arith.constant 0 : index
    %c0_0 = arith.constant 0 : index
    %c0_1 = arith.constant 0 : index
    %0 = vector.load %arg1[%c0, %c0_0, %c0_1] : memref<1x1x128xf32, #tpu.memory_space<vmem>>, vector<1x1x128xf32>
    %1 = math.roundeven %0 : vector<1x1x128xf32>
    %cst = arith.constant 1.000000e+00 : f32
    %2 = vector.broadcast %cst : f32 to vector<1x1x128xf32>
    %3 = arith.cmpf oeq, %1, %2 : vector<1x1x128xf32>
    %4 = arith.extui %3 : vector<1x1x128xi1> to vector<1x1x128xi32>
    %5 = tpu.iota {dimensions = array<i32: 2>} : vector<1x1x128xi32>
    %c1_i32 = arith.constant 1 : i32
    %6 = tpu.dynamic_rotate %4 by %c1_i32 dim 2 : vector<1x1x128xi32>, i32 -> vector<1x1x128xi32>
    %c1_i32_2 = arith.constant 1 : i32
    %7 = vector.broadcast %c1_i32_2 : i32 to vector<1x1x128xi32>
    %8 = arith.cmpi sge, %5, %7 : vector<1x1x128xi32>
    %c0_i32 = arith.constant 0 : i32
    %9 = vector.broadcast %c0_i32 : i32 to vector<1x1x128xi32>
    %10 = arith.select %8, %6, %9 : vector<1x1x128xi1>, vector<1x1x128xi32>
    %11 = arith.addi %4, %10 : vector<1x1x128xi32>
    %c2_i32 = arith.constant 2 : i32
    %12 = tpu.dynamic_rotate %11 by %c2_i32 dim 2 : vector<1x1x128xi32>, i32 -> vector<1x1x128xi32>
    %c2_i32_3 = arith.constant 2 : i32
    %13 = vector.broadcast %c2_i32_3 : i32 to vector<1x1x128xi32>
    %14 = arith.cmpi sge, %5, %13 : vector<1x1x128xi32>
    %c0_i32_4 = arith.constant 0 : i32
    %15 = vector.broadcast %c0_i32_4 : i32 to vector<1x1x128xi32>
    %16 = arith.select %14, %12, %15 : vector<1x1x128xi1>, vector<1x1x128xi32>
    %17 = arith.addi %11, %16 : vector<1x1x128xi32>
    %c4_i32 = arith.constant 4 : i32
    %18 = tpu.dynamic_rotate %17 by %c4_i32 dim 2 : vector<1x1x128xi32>, i32 -> vector<1x1x128xi32>
    %c4_i32_5 = arith.constant 4 : i32
    %19 = vector.broadcast %c4_i32_5 : i32 to vector<1x1x128xi32>
    %20 = arith.cmpi sge, %5, %19 : vector<1x1x128xi32>
    %c0_i32_6 = arith.constant 0 : i32
    %21 = vector.broadcast %c0_i32_6 : i32 to vector<1x1x128xi32>
    %22 = arith.select %20, %18, %21 : vector<1x1x128xi1>, vector<1x1x128xi32>
    %23 = arith.addi %17, %22 : vector<1x1x128xi32>
    %24 = arith.subi %23, %4 : vector<1x1x128xi32>
    %c-1_i32 = arith.constant -1 : i32
    %25 = vector.broadcast %c-1_i32 : i32 to vector<1x1x128xi32>
    %26 = arith.select %3, %24, %25 : vector<1x1x128xi1>, vector<1x1x128xi32>
    %27 = vector.extract_strided_slice %26 {offsets = [0, 0, 0], sizes = [1, 1, 8], strides = [1, 1, 1]} : vector<1x1x128xi32> to vector<1x1x8xi32>
    %28 = tpu.iota {dimensions = array<i32: 1>} : vector<1x6x8xi32>
    %29 = vector.broadcast %27 : vector<1x1x8xi32> to vector<1x6x8xi32>
    %30 = arith.cmpi eq, %29, %28 : vector<1x6x8xi32>
    %31 = arith.extui %30 : vector<1x6x8xi1> to vector<1x6x8xi32>
    %32 = arith.sitofp %31 : vector<1x6x8xi32> to vector<1x6x8xf32>
    %c0_7 = arith.constant 0 : index
    %c0_8 = arith.constant 0 : index
    %c0_9 = arith.constant 0 : index
    %33 = vector.load %arg2[%c0_7, %c0_8, %c0_9] : memref<1x8x32xf32, #tpu.memory_space<vmem>>, vector<1x8x32xf32>
    "tpu.trace_start"() <{level = 10 : i32, message = "bts,bse->bte"}> : () -> ()
    %cst_10 = arith.constant dense<0.000000e+00> : vector<1x6x32xf32>
    %34 = tpu.matmul %32, %33, %cst_10 {dimension_numbers = #tpu.dot_dimension_numbers<[2], [1], [1], [2], [0, 0, 0, 1, 1, 2], [0], [0]>} : vector<1x6x8xf32>, vector<1x8x32xf32>, vector<1x6x32xf32> -> vector<1x6x32xf32>
    "tpu.trace_stop"() : () -> ()
    %c0_11 = arith.constant 0 : index
    %c0_12 = arith.constant 0 : index
    %c0_13 = arith.constant 0 : index
    %35 = vector.load %arg3[%c0_11, %c0_12, %c0_13] : memref<1x6x32xf32, #tpu.memory_space<vmem>>, vector<1x6x32xf32>
    tpu.vector_store %arg3[%c0_11, %c0_12, %c0_13], %34 {strides = array<i32>} : memref<1x6x32xf32, #tpu.memory_space<vmem>>, vector<1x6x32xf32>,
    return
  }
  func.func @transform_0(%arg0: i32) -> (i32, i32, i32) {
    %c0_i32 = arith.constant 0 : i32
    %c0_i32_0 = arith.constant 0 : i32
    %c0_i32_1 = arith.constant 0 : i32
    return %arg0, %c0_i32, %c0_i32_0 : i32, i32, i32
  }
  func.func @transform_1(%arg0: i32) -> (i32, i32, i32) {
    %c0_i32 = arith.constant 0 : i32
    %c0_i32_0 = arith.constant 0 : i32
    %c0_i32_1 = arith.constant 0 : i32
    return %arg0, %c0_i32, %c0_i32_0 : i32, i32, i32
  }
  func.func @transform_2(%arg0: i32) -> (i32, i32, i32) {
    %c0_i32 = arith.constant 0 : i32
    %c0_i32_0 = arith.constant 0 : i32
    %c0_i32_1 = arith.constant 0 : i32
    return %arg0, %c0_i32, %c0_i32_0 : i32, i32, i32
  }
}

</mosaic_0001>

<bundles_post_ra>
// kernel: tpu_custom_call.1
= control target key start
LH: loop header
LB: loop body
LE: loop exit
PB: predicated region body
PF: predicated region fallthrough
CT: control target
= control target key end

     0   :  { %7 = vsyncpa [#allocation3], 0  ;;  %s1155_s0 = inlined_call_operand.hbm [shape: f32[2,1,128], index: 0, kind: input, shape index: {}]   ;;  %s1156_s1 = inlined_call_operand.hbm [shape: f32[2,8,32], index: 1, kind: input, shape index: {}]   ;;  %s1157_s2 = inlined_call_operand.vmem [shape: f32[2,6,32], index: 2, kind: output, shape index: {}]  }
   0x1   :  { %9 = vsyncpa [#allocation3 + $0x1], 0 }
   0x2   :  { %10 = vsyncpa [#allocation5], 0 }
   0x3   :  { %12 = vsyncpa [#allocation5 + $0x1], 0  ;;  %s997_s9 = smov 0   ;;  %s999_s10 = smov 0  }
   0x4   :  { %s1001_s11 = smov 0   ;;  %s1003_s12 = smov 0  }
   0x5 LB: > { %s1016_s13 = sadd.s32 4294967295, %s972_s12   ;;  %s1019_s14 = sadd.s32 1, %s972_s12   ;;  %s972_s12 = sphi %s1003_s12, %s1171_s12   ;;  %s968_s11 = sphi %s1001_s11, %s1170_s11   ;;  %s964_s10 = sphi %s999_s10, %s1169_s10   ;;  %s960_s9 = sphi %s997_s9, %s1168_s9  }
   0x6   : > { %s22_s15 = ssub.s32 %s972_s12, %s1019_s14  ;;  %s25_s16 = sadd.s32 1, %s968_s11 }
   0x7   : > { %p23_p0 = scmp.eq.s32.totalorder %s22_s15, 0  ;;  %p32_p1 = scmp.ne.s32.totalorder %s968_s11, %s964_s10 }
   0x8   : > { %p33_p2 = scmp.eq.s32.totalorder %s972_s12, 0  ;;  %p38_p3 = scmp.ne.s32.totalorder %s964_s10, %s960_s9 }
   0x9   : > { %s1029_s17 = scalar_select %p23_p0, %s968_s11, %s25_s16  }
   0xa   : > { %p34_p4 = por %p33_p2, %p32_p1  ;;  %p39_p5 = scmp.eq.s32.totalorder %s1016_s13, 0 }
   0xb   : > { %p839_p6 = scmp.lt.s32.totalorder %s972_s12, 2  ;;  %s1038_s19 = sand.u32 1, %s968_s11  }
   0xc   : > { %p1033_p7 = por %p39_p5, %p38_p3  ;;  %s766_s20 = sshll.u32 %s972_s12, 4 }
   0xd   : > { %s117_s21 = scalar_lea.vmem [#allocation2], %s1038_s19  ;;  %s1045_s25 = scalar_lea.hbm %s1155_s0, %s766_s20 }
   0xe   : > { %s1159_s18 = scalar_select %p1033_p7, 1, 0 }
   0xf   : > { %s124_s22 = sshll.u32 %s117_s21, 4  ;;  %p1049_p8 = pnand %p839_p6, %p34_p4  ;;  %s1047_s22 = int_to_ptr.vmem [resolvable:$true] %s124_s22 }
  0x10   : > { %s767_s27 = sshll.u32 %s1038_s19, 3  ;;  %s115_s28 = scalar_lea.sflag [#allocation3], %s1038_s19 }
  0x11   : > { %s878_s29 = scalar_lea.hbm %s1045_s25, 16  ;;  %p880_p12 = pneg %p1049_p8 }
  0x12   : > { %p879_p11 = scmp.ne.s32.totalorder %s1045_s25, %s878_s29  ;;  %s883_s4 = scalar_lea.hbm %s1155_s0, 32 }
  0x13   : > { %p884_p1 = scmp.lt.s32.totalorder %s1045_s25, %s1155_s0  ;;  %p885_p2 = scmp.lt.s32.totalorder %s883_s4, %s878_s29 }
  0x14   : > { %p881_p13 = pnand %p880_p12, %p879_p11 }
  0x15   : > { %p886_p3 = por %p885_p2, %p884_p1 }
  0x16   : > { %p882_p0 = pneg %p881_p13 }
  0x18   : > { %p887_p4 = pnand %p886_p3, %p882_p0 }
  0x1a   : > { %890 = shalt.err (!%p887_p4)
}
  0x1b   : > { %s891_s7 = scalar_lea.vmem %s1047_s22, 16  ;;  %s974_s8 = smov [#allocation2]  }
  0x1c   : > { %p892_p5 = scmp.ne.s32.totalorder %s1047_s22, %s891_s7  ;;  %s896_s9 = sshll.u32 %s974_s8, 4  ;;  %s897_s9 = int_to_ptr.vmem [resolvable:$false] %s896_s9 }
  0x1d   : > { %s898_s15 = scalar_lea.vmem %s897_s9, 32  ;;  %p899_p13 = scmp.lt.s32.totalorder %s1047_s22, %s897_s9 }
  0x1e   : > { %p894_p6 = pnand %p892_p5, %p880_p12  ;;  %p900_p9 = scmp.lt.s32.totalorder %s898_s15, %s891_s7 }
  0x20   : > { %p895_p11 = pneg %p894_p6  ;;  %p901_p10 = por %p900_p9, %p899_p13 }
  0x22   : > { %p902_p1 = pnand %p901_p10, %p895_p11 }
  0x24   : > { %905 = shalt.err (!%p902_p1)
}
  0x25   : > { %835 = dma.hbm_to_vmem [thread:$0]  (!%p1049_p8), %s1045_s25, 16, %s1047_s22, %s115_s28  }
  0x26   : > { %p1161_p0 = scmp.lt.s32.totalorder %s972_s12, 3  ;;  %p1162_p2 = scmp.ge.s32.totalorder %s972_s12, 1 }
  0x27   : > { %s768_s20 = sshll.u32 %s972_s12, 7  ;;  %s135_s21 = scalar_lea.vmem [#allocation4], %s767_s27 }
  0x28   : > { %p1085_p3 = pnand %p1162_p2, %p1161_p0  ;;  %s142_s23 = sshll.u32 %s135_s21, 4  ;;  %s143_s23 = int_to_ptr.vmem [resolvable:$true] %s142_s23 }
  0x29   : > { %s140_s30 = scalar_lea.hbm %s1156_s1, %s768_s20  ;;  %s132_s3 = scalar_lea.sflag [#allocation5], %s1038_s19 }
  0x2a   : > { %s1163_s16 = scalar_select %p1085_p3, 1, 0 }
  0x2b   : > { %s906_s4 = scalar_lea.hbm %s140_s30, 128  ;;  %s911_s28 = scalar_lea.hbm %s1156_s1, 256 }
  0x2c   : > { %p907_p9 = scmp.ne.s32.totalorder %s140_s30, %s906_s4  ;;  %p912_p5 = scmp.lt.s32.totalorder %s140_s30, %s1156_s1 }
  0x2d   : > { %p913_p6 = scmp.lt.s32.totalorder %s911_s28, %s906_s4 }
  0x2e   : > { %p909_p10 = pnand %p907_p9, %p880_p12 }
  0x2f   : > { %p914_p11 = por %p913_p6, %p912_p5 }
  0x30   : > { %p910_p4 = pneg %p909_p10 }
  0x32   : > { %p915_p13 = pnand %p914_p11, %p910_p4 }
  0x34   : > { %918 = shalt.err (!%p915_p13)
}
  0x35   : > { %s919_s27 = scalar_lea.vmem %s143_s23, 128  ;;  %s975_s19 = smov [#allocation4]  }
  0x36   : > { %p920_p1 = scmp.ne.s32.totalorder %s143_s23, %s919_s27  ;;  %s924_s6 = sshll.u32 %s975_s19, 4  ;;  %s925_s6 = int_to_ptr.vmem [resolvable:$false] %s924_s6 }
  0x37   : > { %s926_s7 = scalar_lea.vmem %s925_s6, 256  ;;  %p927_p9 = scmp.lt.s32.totalorder %s143_s23, %s925_s6 }
  0x38   : > { %p922_p0 = pnand %p920_p1, %p880_p12  ;;  %p928_p10 = scmp.lt.s32.totalorder %s926_s7, %s919_s27 }
  0x3a   : > { %p923_p2 = pneg %p922_p0  ;;  %p929_p7 = por %p928_p10, %p927_p9 }
  0x3c   : > { %p930_p3 = pnand %p929_p7, %p923_p2 }
  0x3e   : > { %933 = shalt.err (!%p930_p3)
}
  0x3f   : > { %838 = dma.hbm_to_vmem [thread:$0]  (!%p1049_p8), %s140_s30, 128, %s143_s23, %s132_s3  }
  0x40   : > { %p1164_p4 = scmp.ne.s32.totalorder %s1163_s16, 0 }
  0x41   : > { %s153_s8 = sand.u32 (!%p1164_p4), 1, %s964_s10   ;;  %p1165_p12 = scmp.ne.s32.totalorder (!%p1164_p4), %s1159_s18, 0 }
  0x42   : > { %151 = sbr.rel (%p1164_p4) target bundleno = 663 (0x297), region = 28  ;;  %s154_s9 = scalar_lea.sflag (!%p1164_p4), [#allocation3], %s153_s8 }
  0x43   : > { %s156_s15 = scalar_lea.vmem (!%p1164_p4), [#allocation2], %s153_s8 }
  0x47   : > { %951 = dma.done.wait (%p1165_p12), %s154_s9, 16  }
  0x48   : > { %953 = vsyncadd (%p1165_p12), %s154_s9, 4294967280  ;;  %s770_s20 = sshll.u32 %s153_s8, 3  ;;  %s162_s21 = scalar_lea.sflag [#allocation5], %s153_s8 }
  0x49   : > { %s165_s24 = scalar_lea.vmem [#allocation4], %s770_s20 }
  0x4a   : > { %955 = dma.done.wait (%p1165_p12), %s162_s21, 128  }
  0x4b   : > { %957 = vsyncadd (%p1165_p12), %s162_s21, 4294967168  ;;  %v193_v0 = vld [vmem:[%s156_s15] sm:$0x1]  ;;  %v976_v9 = vmov 0   ;;  %s977_s26 = smov 1   ;;  %v197_v11 = vlaneseq  ;;  %s978_s18 = smov 2  }
  0x4c   : > { %v822_v1 = vcvt.f32.s32 %v193_v0  ;;  %v820_v2 = vand.u32 2147483647, %v193_v0  ;;  %v825_v4 = vand.u32 2147483648, %v193_v0  ;;  %v225_v16 = vld [vmem:[%s165_s24] sm:$0xff]  ;;  %v979_v21 = vmov 0.0   ;;  %s981_s16 = smov 4  }
  0x4d   : > { %v198_v12 = vand.u32 127, %v197_v11  ;;  %v261_v17 = vand.u32 4294901760, %v225_v16  ;;  %795 = vmatprep.subr.mxu1 %v979_v21  ;;  %vm980_vm3 = vmmov 0   ;;  %790 = vmatprep.subr.mxu0 %v979_v21  ;;  %v217_v26 = vshrl.u32 %v197_v11, 7  ;;  %p189_p7 = scmp.lt.s32.totalorder %s1016_s13, 1 }
  0x4e   : > { %v823_v3 = vcvt.s32.f32 %v822_v1  ;;  %vm821_vm0 = vcmp.lt.f32.partialorder %v820_v2, 8388608.0  ;;  %797 = vmatprep.mubr.msk.f32.mxu1 %vm980_vm3, %v979_v21  ;;  %792 = vmatprep.mubr.msk.f32.mxu0 %vm980_vm3, %v979_v21  ;;  %vm226_vm6 = vcmask 64512   ;;  %vm676_vm8 = vcmask 259072  }
  0x4f   : > { %vm201_vm2 = vcmp.ge.s32.totalorder %v198_v12, 1  ;;  %v338_v18 = vsub.f32 %v225_v16, %v261_v17  ;;  %vm206_vm4 = vcmp.ge.s32.totalorder %v198_v12, 2  ;;  %791 = vmatpush3.msra.mxu0 %v261_v17  ;;  %vm211_vm5 = vcmp.ge.s32.totalorder %v198_v12, 4  ;;  %s1173_s13 = smov (!%p189_p7, %s1016_s13), 1 }
  0x50   : > { %v824_v5 = vand.u32 2147483647, %v823_v3  ;;  %800 = vmatprep.subr.mxu0 %v979_v21  ;;  %v220_v30 = vsub.s32 0, %v217_v26  ;;  %s771_s23 = sshll.u32 %s1173_s13, 3 }
  0x51   : > { %v339_v19 = vand.u32 4294901760, %v338_v18  ;;  %s192_s3 = scalar_lea.vmem %s1157_s2, %s771_s23 }
  0x52   : > { %v826_v6 = vor.u32 %v825_v4, %v824_v5 }
  0x53   : > { %v340_v20 = vsub.f32 %v338_v18, %v339_v19 }
  0x54   : > { %v827_v7 = vsel %vm821_vm0, %v826_v6, %v193_v0 }
  0x55   : > { %vm1119_vm1 = vcmp.eq.f32.partialorder %v827_v7, 1.0  ;;  %v341_v22 = vand.u32 4294901760, %v340_v20 }
  0x56   : > { %v196_v10 = vsel %vm1119_vm1, 1, %v976_v9 }
  0x57   : > { %199 = vrot.lane.b32.xlu0 %v196_v10, %s977_s26  ;;  %796 = vmatpush3.msra.mxu1 %v341_v22 }
  0x58   : > { %805 = vmatprep.subr.mxu1 %v979_v21 }
  0xc9   : > { %v200_v13 = vpop.permute.xlu0 %199 }
  0xca   : > { %v202_v14 = vsel %vm201_vm2, %v200_v13, 0 }
  0xcb   : > { %v203_v15 = vadd.s32 %v202_v14, %v196_v10 }
  0xcd   : > { %204 = vrot.lane.b32.xlu0 %v203_v15, %s978_s18 }
 0x13f   : > { %v205_v23 = vpop.permute.xlu0 %204 }
 0x140   : > { %v207_v24 = vsel %vm206_vm4, %v205_v23, 0 }
 0x141   : > { %v208_v25 = vadd.s32 %v207_v24, %v203_v15 }
 0x143   : > { %209 = vrot.lane.b32.xlu1 %v208_v25, %s981_s16 }
 0x1b5   : > { %v210_v27 = vpop.permute.xlu1 %209 }
 0x1b6   : > { %v212_v28 = vsel %vm211_vm5, %v210_v27, 0 }
 0x1b7   : > { %v213_v29 = vadd.s32 %v212_v28, %v208_v25 }
 0x1b9   : > { %v214_v31 = vsub.s32 %v213_v29, %v196_v10 }
 0x1bb   : > { %v215_v32 = vsel %vm1119_vm1, %v214_v31, 4294967295 }
 0x1bc   : > { %v221_v33 = vrot.slane %v215_v32, %v220_v30 }
 0x1be   : > { %vm222_vm7 = vcmp.eq.s32.totalorder %v221_v33, %v217_v26 }
 0x1bf   : > { %v772_v34 = vsel %vm222_vm7, 1.0, %v979_v21 }
 0x1c0   : > { %v228_v35 = vsel %vm226_vm6, %v772_v34, 0  ;;  %798 = vmatmul.mubr.msk.f32.vlgmr.msra.gmra.mxu1 %vm226_vm6, %v772_v34 }
 0x1c1   : > { %v297_v36 = vsub.f32 %v228_v35, %v228_v35  ;;  %806 = vmatpush3.msra.mxu1 %v261_v17  ;;  %807 = vmatprep.mubr.msk.f32.mxu1 %vm980_vm3, %v979_v21 }
 0x1c2   : > { %815 = vmatprep.subr.mxu1 %v979_v21 }
 0x1c3   : > { %v298_v37 = vand.u32 4294901760, %v297_v36 }
 0x1c5   : > { %808 = vmatmul.mubr.f32.vlgmr.msra.gmra.mxu1 %v298_v37  ;;  %v299_v38 = vsub.f32 %v297_v36, %v298_v37 }
 0x1c6   : > { %816 = vmatpush3.msra.mxu1 %v261_v17  ;;  %817 = vmatprep.mubr.msk.f32.mxu1 %vm980_vm3, %v979_v21 }
 0x1c7   : > { %v300_v39 = vand.u32 4294901760, %v299_v38 }
 0x1c9   : > { %793 = vmatmul.mubr.f32.vlgmr.msra.gmra.mxu0 %v300_v39  ;;  %818 = vmatmul.mubr.msk.f32.vlgmr.msra.gmra.mxu1 %vm226_vm6, %v772_v34 }
 0x1ca   : > { %801 = vmatpush3.msra.mxu0 %v338_v18  ;;  %802 = vmatprep.mubr.msk.f32.mxu0 %vm980_vm3, %v979_v21 }
 0x1cb   : > { %810 = vmatprep.subr.mxu0 %v979_v21 }
 0x1cd   : > { %803 = vmatmul.mubr.f32.vlgmr.msra.gmra.mxu0 %v297_v36 }
 0x1ce   : > { %811 = vmatpush3.msra.mxu0 %v339_v19  ;;  %812 = vmatprep.mubr.msk.f32.mxu0 %vm980_vm3, %v979_v21 }
 0x1d1   : > { %813 = vmatmul.mubr.msk.f32.vlgmr.msra.gmra.mxu0 %vm226_vm6, %v772_v34 }
 0x280   : > { %v378_v40 = vpop.f32.mrf.mxu1 }
 0x282   : > { %v799_v41 = vpop.f32.mrf.mxu1 }
 0x285   : > { %v526_v42 = vpop.f32.mrf.mxu1 }
 0x287   : > { %v809_v43 = vpop.f32.mrf.mxu1 }
 0x289   : > { %v302_v44 = vpop.f32.mrf.mxu0  ;;  %v672_v45 = vpop.f32.mrf.mxu1 }
 0x28a   : > { %v379_v48 = vadd.f32 %v378_v40, %v302_v44 }
 0x28b   : > { %v794_v46 = vpop.f32.mrf.mxu0  ;;  %v819_v47 = vpop.f32.mrf.mxu1 }
 0x28d   : > { %v452_v49 = vpop.f32.mrf.mxu0 }
 0x28e   : > { %v453_v50 = vadd.f32 %v452_v49, %v379_v48 }
 0x28f   : > { %v804_v51 = vpop.f32.mrf.mxu0 }
 0x290   : > { %v527_v52 = vadd.f32 %v526_v42, %v453_v50 }
 0x291   : > { %v600_v53 = vpop.f32.mrf.mxu0 }
 0x292   : > { %v601_v54 = vadd.f32 %v600_v53, %v527_v52 }
 0x293   : > { %v814_v55 = vpop.f32.mrf.mxu0 }
 0x294   : > { %v673_v56 = vadd.f32 %v672_v45, %v601_v54 }
 0x296   : > { %677 = vst.msk [vmem:[%s192_s3] sm:$0x3f] %vm676_vm8, %v673_v56 }
 0x297 PF: > { %p15_p8 = scmp.ge.s32.totalorder %s1019_s14, 4   ;;  %s1168_s9 = smov %s964_s10 }
 0x298   : > { %s1169_s10 = smov %s968_s11  ;;  %s1170_s11 = smov %s1029_s17 }
 0x299   : > { %s1171_s12 = smov %s1019_s14  ;;  %17 = sbr.rel (!%p15_p8) target bundleno = 5 (0x5), region = 81 }
 0x29e   :  { %697 = vsyncpa [#allocation3], 1 }
 0x29f   :  { %699 = vsyncpa [#allocation3 + $0x1], 1 }
 0x2a0   :  { %700 = vsyncpa [#allocation5], 1 }
 0x2a1   :  { %702 = vsyncpa [#allocation5 + $0x1], 1 }

// kernel: tpu_custom_call.1
= control target key start
LH: loop header
LB: loop body
LE: loop exit
PB: predicated region body
PF: predicated region fallthrough
CT: control target
= control target key end

     0   :  { %7 = vsyncpa [#allocation3], 0  ;;  %s732_s0 = inlined_call_operand.hbm [shape: f32[2,1,128], index: 0, kind: input, shape index: {}]   ;;  %s733_s1 = inlined_call_operand.hbm [shape: f32[2,8,32], index: 1, kind: input, shape index: {}]   ;;  %s734_s2 = inlined_call_operand.vmem [shape: f32[2,6,32], index: 2, kind: output, shape index: {}]  }
   0x1   :  { %9 = vsyncpa [#allocation3 + $0x1], 0 }
   0x2   :  { %10 = vsyncpa [#allocation5], 0 }
   0x3   :  { %12 = vsyncpa [#allocation5 + $0x1], 0  ;;  %s584_s9 = smov 0   ;;  %s586_s10 = smov 0  }
   0x4   :  { %s588_s11 = smov 0   ;;  %s590_s12 = smov 0  }
   0x5 LB: > { %s603_s13 = sadd.s32 4294967295, %s559_s12   ;;  %s606_s14 = sadd.s32 1, %s559_s12   ;;  %s559_s12 = sphi %s590_s12, %s748_s12   ;;  %s555_s11 = sphi %s588_s11, %s747_s11   ;;  %s551_s10 = sphi %s586_s10, %s746_s10   ;;  %s547_s9 = sphi %s584_s9, %s745_s9  }
   0x6   : > { %s22_s15 = ssub.s32 %s559_s12, %s606_s14  ;;  %s25_s16 = sadd.s32 1, %s555_s11 }
   0x7   : > { %p23_p0 = scmp.eq.s32.totalorder %s22_s15, 0  ;;  %p32_p1 = scmp.ne.s32.totalorder %s555_s11, %s551_s10 }
   0x8   : > { %p33_p2 = scmp.eq.s32.totalorder %s559_s12, 0  ;;  %p38_p3 = scmp.ne.s32.totalorder %s551_s10, %s547_s9 }
   0x9   : > { %s616_s17 = scalar_select %p23_p0, %s555_s11, %s25_s16  }
   0xa   : > { %p34_p4 = por %p33_p2, %p32_p1  ;;  %p39_p5 = scmp.eq.s32.totalorder %s603_s13, 0 }
   0xb   : > { %p426_p6 = scmp.lt.s32.totalorder %s559_s12, 2  ;;  %s625_s19 = sand.u32 1, %s555_s11  }
   0xc   : > { %p620_p7 = por %p39_p5, %p38_p3  ;;  %s390_s20 = sshll.u32 %s559_s12, 4 }
   0xd   : > { %s117_s21 = scalar_lea.vmem [#allocation2], %s625_s19  ;;  %s632_s25 = scalar_lea.hbm %s732_s0, %s390_s20 }
   0xe   : > { %s736_s18 = scalar_select %p620_p7, 1, 0 }
   0xf   : > { %s124_s22 = sshll.u32 %s117_s21, 4  ;;  %p636_p8 = pnand %p426_p6, %p34_p4  ;;  %s634_s22 = int_to_ptr.vmem [resolvable:$true] %s124_s22 }
  0x10   : > { %s391_s27 = sshll.u32 %s625_s19, 3  ;;  %s115_s28 = scalar_lea.sflag [#allocation3], %s625_s19 }
  0x11   : > { %s465_s29 = scalar_lea.hbm %s632_s25, 16  ;;  %p467_p12 = pneg %p636_p8 }
  0x12   : > { %p466_p11 = scmp.ne.s32.totalorder %s632_s25, %s465_s29  ;;  %s470_s4 = scalar_lea.hbm %s732_s0, 32 }
  0x13   : > { %p471_p1 = scmp.lt.s32.totalorder %s632_s25, %s732_s0  ;;  %p472_p2 = scmp.lt.s32.totalorder %s470_s4, %s465_s29 }
  0x14   : > { %p468_p13 = pnand %p467_p12, %p466_p11 }
  0x15   : > { %p473_p3 = por %p472_p2, %p471_p1 }
  0x16   : > { %p469_p0 = pneg %p468_p13 }
  0x18   : > { %p474_p4 = pnand %p473_p3, %p469_p0 }
  0x1a   : > { %477 = shalt.err (!%p474_p4)
}
  0x1b   : > { %s478_s7 = scalar_lea.vmem %s634_s22, 16  ;;  %s561_s8 = smov [#allocation2]  }
  0x1c   : > { %p479_p5 = scmp.ne.s32.totalorder %s634_s22, %s478_s7  ;;  %s483_s9 = sshll.u32 %s561_s8, 4  ;;  %s484_s9 = int_to_ptr.vmem [resolvable:$false] %s483_s9 }
  0x1d   : > { %s485_s15 = scalar_lea.vmem %s484_s9, 32  ;;  %p486_p13 = scmp.lt.s32.totalorder %s634_s22, %s484_s9 }
  0x1e   : > { %p481_p6 = pnand %p479_p5, %p467_p12  ;;  %p487_p9 = scmp.lt.s32.totalorder %s485_s15, %s478_s7 }
  0x20   : > { %p482_p11 = pneg %p481_p6  ;;  %p488_p10 = por %p487_p9, %p486_p13 }
  0x22   : > { %p489_p1 = pnand %p488_p10, %p482_p11 }
  0x24   : > { %492 = shalt.err (!%p489_p1)
}
  0x25   : > { %422 = dma.hbm_to_vmem [thread:$0]  (!%p636_p8), %s632_s25, 16, %s634_s22, %s115_s28  }
  0x26   : > { %p738_p0 = scmp.lt.s32.totalorder %s559_s12, 3  ;;  %p739_p2 = scmp.ge.s32.totalorder %s559_s12, 1 }
  0x27   : > { %s392_s20 = sshll.u32 %s559_s12, 7  ;;  %s135_s21 = scalar_lea.vmem [#allocation4], %s391_s27 }
  0x28   : > { %p672_p3 = pnand %p739_p2, %p738_p0  ;;  %s142_s23 = sshll.u32 %s135_s21, 4  ;;  %s143_s23 = int_to_ptr.vmem [resolvable:$true] %s142_s23 }
  0x29   : > { %s140_s30 = scalar_lea.hbm %s733_s1, %s392_s20  ;;  %s132_s3 = scalar_lea.sflag [#allocation5], %s625_s19 }
  0x2a   : > { %s740_s16 = scalar_select %p672_p3, 1, 0 }
  0x2b   : > { %s493_s4 = scalar_lea.hbm %s140_s30, 128  ;;  %s498_s28 = scalar_lea.hbm %s733_s1, 256 }
  0x2c   : > { %p494_p9 = scmp.ne.s32.totalorder %s140_s30, %s493_s4  ;;  %p499_p5 = scmp.lt.s32.totalorder %s140_s30, %s733_s1 }
  0x2d   : > { %p500_p6 = scmp.lt.s32.totalorder %s498_s28, %s493_s4 }
  0x2e   : > { %p496_p10 = pnand %p494_p9, %p467_p12 }
  0x2f   : > { %p501_p11 = por %p500_p6, %p499_p5 }
  0x30   : > { %p497_p4 = pneg %p496_p10 }
  0x32   : > { %p502_p13 = pnand %p501_p11, %p497_p4 }
  0x34   : > { %505 = shalt.err (!%p502_p13)
}
  0x35   : > { %s506_s27 = scalar_lea.vmem %s143_s23, 128  ;;  %s562_s19 = smov [#allocation4]  }
  0x36   : > { %p507_p1 = scmp.ne.s32.totalorder %s143_s23, %s506_s27  ;;  %s511_s6 = sshll.u32 %s562_s19, 4  ;;  %s512_s6 = int_to_ptr.vmem [resolvable:$false] %s511_s6 }
  0x37   : > { %s513_s7 = scalar_lea.vmem %s512_s6, 256  ;;  %p514_p9 = scmp.lt.s32.totalorder %s143_s23, %s512_s6 }
  0x38   : > { %p509_p0 = pnand %p507_p1, %p467_p12  ;;  %p515_p10 = scmp.lt.s32.totalorder %s513_s7, %s506_s27 }
  0x3a   : > { %p510_p2 = pneg %p509_p0  ;;  %p516_p7 = por %p515_p10, %p514_p9 }
  0x3c   : > { %p517_p3 = pnand %p516_p7, %p510_p2 }
  0x3e   : > { %520 = shalt.err (!%p517_p3)
}
  0x3f   : > { %425 = dma.hbm_to_vmem [thread:$0]  (!%p636_p8), %s140_s30, 128, %s143_s23, %s132_s3  }
  0x40   : > { %p741_p4 = scmp.ne.s32.totalorder %s740_s16, 0 }
  0x41   : > { %s153_s8 = sand.u32 (!%p741_p4), 1, %s551_s10   ;;  %p742_p12 = scmp.ne.s32.totalorder (!%p741_p4), %s736_s18, 0 }
  0x42   : > { %151 = sbr.rel (%p741_p4) target bundleno = 643 (0x283), region = 28  ;;  %s154_s9 = scalar_lea.sflag (!%p741_p4), [#allocation3], %s153_s8 }
  0x43   : > { %s156_s15 = scalar_lea.vmem (!%p741_p4), [#allocation2], %s153_s8 }
  0x47   : > { %538 = dma.done.wait (%p742_p12), %s154_s9, 16  }
  0x48   : > { %540 = vsyncadd (%p742_p12), %s154_s9, 4294967280  ;;  %s394_s20 = sshll.u32 %s153_s8, 3  ;;  %s162_s21 = scalar_lea.sflag [#allocation5], %s153_s8 }
  0x49   : > { %s165_s24 = scalar_lea.vmem [#allocation4], %s394_s20 }
  0x4a   : > { %542 = dma.done.wait (%p742_p12), %s162_s21, 128  }
  0x4b   : > { %544 = vsyncadd (%p742_p12), %s162_s21, 4294967168  ;;  %v193_v0 = vld [vmem:[%s156_s15] sm:$0x1]  ;;  %v563_v9 = vmov 0   ;;  %s564_s26 = smov 1   ;;  %v197_v11 = vlaneseq  ;;  %s565_s18 = smov 2  }
  0x4c   : > { %v409_v1 = vcvt.f32.s32 %v193_v0  ;;  %v407_v2 = vand.u32 2147483647, %v193_v0  ;;  %v412_v4 = vand.u32 2147483648, %v193_v0  ;;  %v225_v16 = vld [vmem:[%s165_s24] sm:$0xff]  ;;  %v566_v17 = vmov 0.0   ;;  %s568_s16 = smov 4  }
  0x4d   : > { %v198_v12 = vand.u32 127, %v197_v11  ;;  %402 = vmatprep.subr.mxu0 %v566_v17  ;;  %vm567_vm3 = vmmov 0   ;;  %v217_v21 = vshrl.u32 %v197_v11, 7  ;;  %vm226_vm6 = vcmask 64512   ;;  %p189_p7 = scmp.lt.s32.totalorder %s603_s13, 1 }
  0x4e   : > { %v410_v3 = vcvt.s32.f32 %v409_v1  ;;  %vm408_vm0 = vcmp.lt.f32.partialorder %v407_v2, 8388608.0  ;;  %404 = vmatprep.mubr.msk.f32.mxu0 %vm567_vm3, %v566_v17  ;;  %403 = vmatpush3.msra.mxu0 %v225_v16  ;;  %vm300_vm8 = vcmask 259072  }
  0x4f   : > { %vm201_vm2 = vcmp.ge.s32.totalorder %v198_v12, 1  ;;  %vm206_vm4 = vcmp.ge.s32.totalorder %v198_v12, 2  ;;  %vm211_vm5 = vcmp.ge.s32.totalorder %v198_v12, 4  ;;  %v220_v25 = vsub.s32 0, %v217_v21  ;;  %s750_s13 = smov (!%p189_p7, %s603_s13), 1 }
  0x50   : > { %v411_v5 = vand.u32 2147483647, %v410_v3  ;;  %s395_s23 = sshll.u32 %s750_s13, 3 }
  0x51   : > { %s192_s3 = scalar_lea.vmem %s734_s2, %s395_s23 }
  0x52   : > { %v413_v6 = vor.u32 %v412_v4, %v411_v5 }
  0x54   : > { %v414_v7 = vsel %vm408_vm0, %v413_v6, %v193_v0 }
  0x55   : > { %vm706_vm1 = vcmp.eq.f32.partialorder %v414_v7, 1.0 }
  0x56   : > { %v196_v10 = vsel %vm706_vm1, 1, %v563_v9 }
  0x57   : > { %199 = vrot.lane.b32.xlu0 %v196_v10, %s564_s26 }
  0xc9   : > { %v200_v13 = vpop.permute.xlu0 %199 }
  0xca   : > { %v202_v14 = vsel %vm201_vm2, %v200_v13, 0 }
  0xcb   : > { %v203_v15 = vadd.s32 %v202_v14, %v196_v10 }
  0xcd   : > { %204 = vrot.lane.b32.xlu0 %v203_v15, %s565_s18 }
 0x13f   : > { %v205_v18 = vpop.permute.xlu0 %204 }
 0x140   : > { %v207_v19 = vsel %vm206_vm4, %v205_v18, 0 }
 0x141   : > { %v208_v20 = vadd.s32 %v207_v19, %v203_v15 }
 0x143   : > { %209 = vrot.lane.b32.xlu1 %v208_v20, %s568_s16 }
 0x1b5   : > { %v210_v22 = vpop.permute.xlu1 %209 }
 0x1b6   : > { %v212_v23 = vsel %vm211_vm5, %v210_v22, 0 }
 0x1b7   : > { %v213_v24 = vadd.s32 %v212_v23, %v208_v20 }
 0x1b9   : > { %v214_v26 = vsub.s32 %v213_v24, %v196_v10 }
 0x1bb   : > { %v215_v27 = vsel %vm706_vm1, %v214_v26, 4294967295 }
 0x1bc   : > { %v221_v28 = vrot.slane %v215_v27, %v220_v25 }
 0x1be   : > { %vm222_vm7 = vcmp.eq.s32.totalorder %v221_v28, %v217_v21 }
 0x1bf   : > { %v396_v29 = vsel %vm222_vm7, 1.0, %v566_v17 }
 0x1c0   : > { %405 = vmatmul.mubr.msk.f32.vlgmr.msra.gmra.mxu0 %vm226_vm6, %v396_v29 }
 0x280   : > { %v296_v30 = vpop.f32.mrf.mxu0 }
 0x281   : > { %301 = vst.msk [vmem:[%s192_s3] sm:$0x3f] %vm300_vm8, %v296_v30 }
 0x282   : > { %v406_v31 = vpop.f32.mrf.mxu0 }
 0x283 PF: > { %p15_p8 = scmp.ge.s32.totalorder %s606_s14, 4   ;;  %s745_s9 = smov %s551_s10 }
 0x284   : > { %s746_s10 = smov %s555_s11  ;;  %s747_s11 = smov %s616_s17 }
 0x285   : > { %s748_s12 = smov %s606_s14  ;;  %17 = sbr.rel (!%p15_p8) target bundleno = 5 (0x5), region = 81 }
 0x28a   :  { %321 = vsyncpa [#allocation3], 1 }
 0x28b   :  { %323 = vsyncpa [#allocation3 + $0x1], 1 }
 0x28c   :  { %324 = vsyncpa [#allocation5], 1 }
 0x28d   :  { %326 = vsyncpa [#allocation5 + $0x1], 1 }

</bundles_post_ra>
